<compile_context>
chip_gen: v7x
topology: tpu7x:2x2x1
jax: 0.10.0
libtpu: 0.0.40
codegen_flags: <defaults>
</compile_context>

<pallas_src>
import numpy as np
import jax
import jax.numpy as jnp
from jax.experimental import pallas as pl
from jax.experimental.pallas import tpu as pltpu


# ----------------------------------------------------------------------------
# Pallas kernel: swap the two minor dims of a [G, A, B] slab -> [G, B, A]
# ----------------------------------------------------------------------------

def _transpose_minor_kernel(x_ref, o_ref):
    # x_ref: (gb, ta, tb) -> o_ref: (gb, tb, ta); lowers to batched XLU transposes.
    o_ref[...] = jnp.swapaxes(x_ref[...], 1, 2)


# Output last dim narrower than this -> masked vst.msk stores dominate; use the
# XLA fallback instead of a Pallas kernel.
_NARROW_LANE_FALLBACK = 32


def _vmem_capacity_bytes() -> int:
    """Physical VMEM of the current part (128 MiB v5e/v6e, 64 MiB/TC v7x)."""
    try:
        return int(pltpu.get_tpu_info().vmem_capacity_bytes)
    except Exception:
        return 64 * 1024 * 1024      # conservative (v7x-sized) default


def _budgets():
    """Generation-aware (scoped-VMEM limit, per-buffer block budget).

    Live footprint ~= 4x the block (input + output, each double-buffered), so
    the block budget is vmem_limit/6 (~1/3 headroom)."""
    cap = _vmem_capacity_bytes()
    vmem_limit = max(32 * 1024 * 1024, min(cap // 2, 64 * 1024 * 1024))
    block_budget = max(1 * 1024 * 1024, vmem_limit // 6)
    return vmem_limit, block_budget


def _pick_tiles(A: int, B: int, itemsize: int, block_budget: int):
    """Pick (ta, tb).  Each swapped dim is the lane dim on one side of the
    transpose, so a tile must be a 128-multiple or the full dim.  A (the
    OUTPUT lane dim) gets first claim on the element budget."""
    max_elems = max(block_budget // itemsize, 8 * 128)

    def clamp_lane(dim, cap_elems):
        cap_elems = max(cap_elems, 128)
        if dim <= cap_elems:
            return dim                              # full dim (always layout-legal)
        return max((cap_elems // 128) * 128, 128)   # largest 128-multiple <= cap

    tb_floor = min(B, 128)
    ta = clamp_lane(A, max_elems // max(tb_floor, 1))
    tb = clamp_lane(B, max_elems // max(ta, 1))
    return ta, tb


def _pick_group_block(G: int, ta: int, tb: int, itemsize: int,
                      block_budget: int, a_steps: int, b_steps: int) -> int:
    """Batch as many leading groups per grid step as fit the block budget,
    but keep >=2 parallel grid steps so both v7x TensorCores get work."""
    per_group = max(ta * tb * itemsize, 1)
    gb = max(1, min(G, block_budget // per_group))
    if a_steps * b_steps == 1 and G >= 2:
        gb = min(gb, max(1, pl.cdiv(G, 4)))
    return gb


def _transpose_minor(x3: jax.Array) -> jax.Array:
    """[G, A, B] -> [G, B, A] with a tiled, pipelined Pallas kernel."""
    G, A, B = x3.shape
    itemsize = x3.dtype.itemsize
    vmem_limit, block_budget = _budgets()

    ta, tb = _pick_tiles(A, B, itemsize, block_budget)
    a_steps = pl.cdiv(A, ta)
    b_steps = pl.cdiv(B, tb)
    gb = _pick_group_block(G, ta, tb, itemsize, block_budget, a_steps, b_steps)
    g_steps = pl.cdiv(G, gb)

    # Innermost grid axis advances the output's last dim -> sequential output HBM.
    grid = (g_steps, b_steps, a_steps)
    return pl.pallas_call(
        _transpose_minor_kernel,
        out_shape=jax.ShapeDtypeStruct((G, B, A), x3.dtype),
        grid=grid,
        in_specs=[pl.BlockSpec((gb, ta, tb), lambda g, jb, ia: (g, ia, jb))],
        out_specs=pl.BlockSpec((gb, tb, ta), lambda g, jb, ia: (g, jb, ia)),
        compiler_params=pltpu.CompilerParams(
            dimension_semantics=("parallel", "parallel", "parallel"),
            vmem_limit_bytes=vmem_limit),
        cost_estimate=pl.CostEstimate(
            flops=0, transcendentals=0,
            bytes_accessed=2 * int(x3.size) * itemsize),
    )(x3)


# ----------------------------------------------------------------------------
# Module wrapper (PyTorch `x.transpose(dim0, dim1)` semantics)
# ----------------------------------------------------------------------------

def pallas_transpose(x: jax.Array, dim0: int, dim1: int) -> jax.Array:
    """Swap exactly two dims of x (PyTorch Tensor.transpose semantics)."""
    nd = x.ndim
    i, j = sorted((dim0 % nd, dim1 % nd))
    if i == j:
        return x
    out_shape = list(x.shape)
    out_shape[i], out_shape[j] = out_shape[j], out_shape[i]

    # Hot path: the swap reduces to the two minor dims of a 3-D view (this is
    # the model's actual usage, e.g. Transpose(1, 2) on [rows, seq, d_model]).
    mid = x.shape[i + 1:j]
    minor_swap = (j == nd - 1) and int(np.prod(mid, dtype=np.int64)) == 1
    if minor_swap and x.shape[i] >= _NARROW_LANE_FALLBACK and x.size > 0:
        lead = x.shape[:i]
        G = int(np.prod(lead, dtype=np.int64)) if lead else 1
        A, B = x.shape[i], x.shape[j]
        y = _transpose_minor(x.reshape(G, A, B))
        return y.reshape(out_shape)

    # TODO(synk): non-minor-dim swaps (not used by PCTFormer) and narrow-lane
    # outputs (output last dim < 32, where masked vst stores -- not DMA --
    # bind; best fused into the consumer, or handled with the bf16->u32 pack
    # trick) fall back to XLA's transpose instead of a Pallas kernel.
    return jnp.swapaxes(x, dim0, dim1)


class Transpose:
    """JAX/Pallas port of the PyTorch `Transpose` nn.Module."""

    def __init__(self, *dims, contiguous=False):
        assert len(dims) == 2, "Transpose expects exactly two dims"
        self.dims = dims
        # `.contiguous()` only affects torch memory layout, not values.
        self.contiguous = contiguous

    def __call__(self, x):
        return pallas_transpose(x, *self.dims)


# ----------------------------------------------------------------------------
# Demo / correctness check
# ----------------------------------------------------------------------------

if __name__ == "__main__":
    key = jax.random.PRNGKey(0)
    k1, k2, k3 = jax.random.split(key, 3)

    # 1) Hot path: Transpose(2, 3) with a lane-dense (128-wide) OUTPUT last dim.
    x = jax.random.normal(k1, (2, 4, 128, 32), jnp.float32)
    out = jax.jit(Transpose(2, 3, contiguous=True))(x)
    jax.block_until_ready(out)
    assert out.shape == (2, 4, 32, 128), out.shape
    assert bool(jnp.array_equal(out, jnp.swapaxes(x, 2, 3)))

    # 2) Model-style usage: Transpose(1, 2) on [rows, d_model, seq]
    #    (the BatchNorm1d wrapper inside the encoder).
    y = jax.random.normal(k2, (8, 128, 64), jnp.float32)
    out2 = jax.jit(Transpose(1, 2))(y)
    jax.block_until_ready(out2)
    assert out2.shape == (8, 64, 128), out2.shape
    assert bool(jnp.array_equal(out2, jnp.swapaxes(y, 1, 2)))

    # 3) Negative-dim form, same Pallas kernel path.
    out3 = jax.jit(Transpose(-1, -2))(x)
    jax.block_until_ready(out3)
    assert bool(jnp.array_equal(out3, jnp.swapaxes(x, -1, -2)))

    # 4) bf16 through the same Pallas path (sublane-packed XLU transpose).
    xb = jax.random.normal(k3, (2, 4, 128, 128), jnp.float32).astype(jnp.bfloat16)
    out4 = jax.jit(Transpose(2, 3))(xb)
    jax.block_until_ready(out4)
    assert bool(jnp.array_equal(out4, jnp.swapaxes(xb, 2, 3)))

    # 5) Narrow output lane (< 32) exercises the documented XLA fallback.
    z = jax.random.normal(k2, (8, 16, 32), jnp.float32)
    out5 = jax.jit(Transpose(1, 2))(z)
    jax.block_until_ready(out5)
    assert bool(jnp.array_equal(out5, jnp.swapaxes(z, 1, 2)))

    # 6) Non-minor swap exercises the documented XLA fallback path.
    out6 = jax.jit(Transpose(1, 2))(x)
    jax.block_until_ready(out6)
    assert bool(jnp.array_equal(out6, jnp.swapaxes(x, 1, 2)))

    print("KERNEL_OK")
</pallas_src>

<mosaic_0001>
module attributes {stable_mosaic.version = 11 : i64} {
  func.func @_transpose_minor_kernel(%arg0: i32, %arg1: i32, %arg2: i32, %arg3: memref<2x128x32xf32, #tpu.memory_space<vmem>>, %arg4: memref<2x32x128xf32, #tpu.memory_space<vmem>>) attributes {dimension_semantics = [#tpu.dimension_semantics<parallel>, #tpu.dimension_semantics<parallel>, #tpu.dimension_semantics<parallel>], iteration_bounds = array<i64: 4, 1, 1>, scalar_prefetch = 0 : i64, scratch_operands = 0 : i64, tpu.core_type = #tpu.core_type<tc>, window_params = [{transform_indices = @transform_0, window_bounds = array<i64: 2, 128, 32>}, {transform_indices = @transform_1, window_bounds = array<i64: 2, 32, 128>}]} {
    %c0 = arith.constant 0 : index
    %c0_0 = arith.constant 0 : index
    %c0_1 = arith.constant 0 : index
    %0 = vector.load %arg3[%c0, %c0_0, %c0_1] : memref<2x128x32xf32, #tpu.memory_space<vmem>>, vector<2x128x32xf32>
    %1 = tpu.transpose %0, [0, 2, 1] : vector<2x128x32xf32> -> vector<2x32x128xf32>
    %c0_2 = arith.constant 0 : index
    %c0_3 = arith.constant 0 : index
    %c0_4 = arith.constant 0 : index
    %2 = vector.load %arg4[%c0_2, %c0_3, %c0_4] : memref<2x32x128xf32, #tpu.memory_space<vmem>>, vector<2x32x128xf32>
    tpu.vector_store %arg4[%c0_2, %c0_3, %c0_4], %1 {strides = array<i32>} : memref<2x32x128xf32, #tpu.memory_space<vmem>>, vector<2x32x128xf32>,
    return
  }
  func.func @transform_0(%arg0: i32, %arg1: i32, %arg2: i32) -> (i32, i32, i32) {
    %c0_i32 = arith.constant 0 : i32
    return %arg0, %arg2, %arg1 : i32, i32, i32
  }
  func.func @transform_1(%arg0: i32, %arg1: i32, %arg2: i32) -> (i32, i32, i32) {
    %c0_i32 = arith.constant 0 : i32
    return %arg0, %arg1, %arg2 : i32, i32, i32
  }
}

</mosaic_0001>

<bundles_post_ra>
// kernel: _unnamed_function_.1
= control target key start
LH: loop header
LB: loop body
LE: loop exit
PB: predicated region body
PF: predicated region fallthrough
CT: control target
= control target key end

     0   :  { %6 = vsyncpa [#allocation3], 0  ;;  %s696_s0 = inlined_call_operand.vmem [shape: f32[8,128,32], index: 0, kind: input, shape index: {}]   ;;  %s697_s1 = inlined_call_operand.hbm [shape: f32[8,32,128], index: 1, kind: output, shape index: {}]  }
   0x1   :  { %8 = vsyncpa [#allocation3 + $0x1], 0  ;;  %s548_s6 = smov 0   ;;  %s550_s7 = smov 0  }
   0x2   :  { %s552_s8 = smov 0   ;;  %s554_s9 = smov 0  }
   0x3   :  { %s556_s10 = smov 0   ;;  %s558_s11 = smov 0  }
   0x4 LB: > { %s380_s12 = sadd.s32 4294967295, %s533_s11   ;;  %s381_s13 = sadd.s32 4294967294, %s533_s11   ;;  %s533_s11 = sphi %s558_s11, %s14_s11   ;;  %s529_s10 = sphi %s556_s10, %s704_s10   ;;  %s525_s9 = sphi %s554_s9, %s703_s9   ;;  %s521_s8 = sphi %s552_s8, %s702_s8   ;;  %s517_s7 = sphi %s550_s7, %s701_s7   ;;  %s513_s6 = sphi %s548_s6, %s700_s6  }
   0x5   : > { %s33_s14 = sadd.s32 1, %s529_s10  ;;  %s74_s15 = sadd.s32 1, %s521_s8 }
   0x6   : > { %p35_p0 = scmp.ge.s32.totalorder %s33_s14, 4  ;;  %p84_p1 = scmp.ne.s32.totalorder %s521_s8, %s517_s7 }
   0x7   : > { %p85_p2 = scmp.eq.s32.totalorder %s380_s12, 3  ;;  %p90_p3 = scmp.ne.s32.totalorder %s517_s7, %s513_s6 }
   0x8   : > { %s706_s14 = smov (%p35_p0, %s33_s14), 0  ;;  %p91_p5 = scmp.eq.s32.totalorder %s381_s13, 3 }
   0x9   : > { %p588_p4 = por %p85_p2, %p84_p1  ;;  %s67_s17 = ssub.s32 %s529_s10, %s706_s14 }
   0xa   : > { %p384_p6 = scmp.ge.s32.totalorder %s533_s11, 1  ;;  %p72_p7 = scmp.eq.s32.totalorder %s67_s17, 0 }
   0xb   : > { %p595_p8 = por %p91_p5, %p90_p3  ;;  %p127_p9 = scmp.lt.s32.totalorder %s533_s11, 5 }
   0xc   : > { %s601_s19 = scalar_select %p72_p7, %s521_s8, %s74_s15  }
   0xd   : > { %p128_p10 = pnand %p384_p6, %p127_p9 }
   0xe   : > { %s386_s20 = sshll.u32 (!%p128_p10), %s525_s9, 1  ;;  %s152_s25 = sand.u32 (!%p128_p10), 1, %s517_s7  }
   0xf   : > { %131 = sbr.rel (%p128_p10) target bundleno = 183 (0xb7), region = 24  ;;  %p157_p11 = scmp.lt.s32.totalorder (!%p128_p10), %s386_s20, 7 }
  0x10   : > { %s385_s26 = sshll.u32 (!%p128_p10), %s152_s25, 6  ;;  %s397_s29 = sshll.u32 (!%p128_p10), %s525_s9, 10 }
  0x11   : > { %s154_s27 = scalar_lea.vmem (!%p128_p10), [#allocation2], %s385_s26  ;;  %s648_s3 = scalar_lea.hbm (!%p128_p10), %s697_s1, %s397_s29 }
  0x12   : > { %s294_s28 = sshll.u32 (!%p128_p10), %s154_s27, 4  ;;  %s650_s4 = scalar_lea.sflag (!%p128_p10), [#allocation3], %s152_s25  ;;  %s643_s28 = int_to_ptr.vmem [resolvable:$true] %s294_s28 }
  0x13   : > { %s455_s5 = scalar_lea.vmem (!%p128_p10), %s643_s28, 1024  ;;  %s535_s9 = smov (!%p128_p10), [#allocation2]  }
  0x14   : > { %p456_p12 = scmp.ne.s32.totalorder (!%p128_p10), %s643_s28, %s455_s5  ;;  %s459_s12 = sshll.u32 (!%p128_p10), %s535_s9, 4  ;;  %s460_s12 = int_to_ptr.vmem [resolvable:$false] %s459_s12 }
  0x15   : > { %s461_s13 = scalar_lea.vmem (!%p128_p10), %s460_s12, 2048  ;;  %p462_p1 = scmp.lt.s32.totalorder (!%p128_p10), %s643_s28, %s460_s12 }
  0x16   : > { %s708_s20 = smov (!%p157_p11, %s386_s20), 7  ;;  %p457_p13 = pnand %p456_p12, %p588_p4 }
  0x17   : > { %s395_s21 = sshll.u32 %s708_s20, 7  ;;  %p463_p2 = scmp.lt.s32.totalorder %s461_s13, %s455_s5 }
  0x18   : > { %s607_s24 = scalar_lea.vmem %s696_s0, %s395_s21  ;;  %p458_p0 = pneg %p457_p13 }
  0x19   : > { %v188_v0 = vld [vmem:[%s607_s24 + $0x80] sm:$0xff]  ;;  %v189_v2 = vld [vmem:[%s607_s24 + $0x88] sm:$0xff]  ;;  %v190_v4 = vld [vmem:[%s607_s24 + $0x90] sm:$0xff]  ;;  %p464_p3 = por %p463_p2, %p462_p1 }
  0x1a   : > { %v172_v1 = vld [vmem:[%s607_s24] sm:$0xff]  ;;  %236 = vxpose.xlu1.b32.start [1/16] (narrow) %v188_v0, 32  ;;  %v173_v3 = vld [vmem:[%s607_s24 + $0x8] sm:$0xff]  ;;  %v174_v5 = vld [vmem:[%s607_s24 + $0x10] sm:$0xff] }
  0x1b   : > { %204 = vxpose.xlu0.b32.start [1/16] (narrow) %v172_v1, 32  ;;  %v191_v6 = vld [vmem:[%s607_s24 + $0x98] sm:$0xff]  ;;  %v192_v8 = vld [vmem:[%s607_s24 + $0xa0] sm:$0xff]  ;;  %v193_v10 = vld [vmem:[%s607_s24 + $0xa8] sm:$0xff]  ;;  %p465_p5 = pnand %p464_p3, %p458_p0 }
  0x1c   : > { %v175_v7 = vld [vmem:[%s607_s24 + $0x18] sm:$0xff]  ;;  %v176_v9 = vld [vmem:[%s607_s24 + $0x20] sm:$0xff]  ;;  %v177_v11 = vld [vmem:[%s607_s24 + $0x28] sm:$0xff] }
  0x1d   : > { %v194_v12 = vld [vmem:[%s607_s24 + $0xb0] sm:$0xff]  ;;  %v195_v14 = vld [vmem:[%s607_s24 + $0xb8] sm:$0xff]  ;;  %v196_v16 = vld [vmem:[%s607_s24 + $0xc0] sm:$0xff] }
  0x1e   : > { %237 = vxpose.xlu1.b32.cont [2/16] (narrow) %v189_v2, 32  ;;  %v178_v13 = vld [vmem:[%s607_s24 + $0x30] sm:$0xff]  ;;  %v179_v15 = vld [vmem:[%s607_s24 + $0x38] sm:$0xff]  ;;  %v180_v17 = vld [vmem:[%s607_s24 + $0x40] sm:$0xff] }
  0x1f   : > { %205 = vxpose.xlu0.b32.cont [2/16] (narrow) %v173_v3, 32  ;;  %v197_v18 = vld [vmem:[%s607_s24 + $0xc8] sm:$0xff]  ;;  %v198_v20 = vld [vmem:[%s607_s24 + $0xd0] sm:$0xff]  ;;  %v199_v22 = vld [vmem:[%s607_s24 + $0xd8] sm:$0xff] }
  0x20   : > { %v181_v19 = vld [vmem:[%s607_s24 + $0x48] sm:$0xff]  ;;  %v182_v21 = vld [vmem:[%s607_s24 + $0x50] sm:$0xff]  ;;  %v183_v23 = vld [vmem:[%s607_s24 + $0x58] sm:$0xff] }
  0x21   : > { %v200_v24 = vld [vmem:[%s607_s24 + $0xe0] sm:$0xff]  ;;  %v201_v26 = vld [vmem:[%s607_s24 + $0xe8] sm:$0xff]  ;;  %v202_v28 = vld [vmem:[%s607_s24 + $0xf0] sm:$0xff] }
  0x22   : > { %238 = vxpose.xlu1.b32.cont [3/16] (narrow) %v190_v4, 32  ;;  %v184_v25 = vld [vmem:[%s607_s24 + $0x60] sm:$0xff]  ;;  %v185_v27 = vld [vmem:[%s607_s24 + $0x68] sm:$0xff]  ;;  %v186_v29 = vld [vmem:[%s607_s24 + $0x70] sm:$0xff] }
  0x23   : > { %206 = vxpose.xlu0.b32.cont [3/16] (narrow) %v174_v5, 32  ;;  %v203_v30 = vld [vmem:[%s607_s24 + $0xf8] sm:$0xff] }
  0x24   : > { %v187_v31 = vld [vmem:[%s607_s24 + $0x78] sm:$0xff] }
  0x26   : > { %239 = vxpose.xlu1.b32.cont [4/16] (narrow) %v191_v6, 32 }
  0x27   : > { %207 = vxpose.xlu0.b32.cont [4/16] (narrow) %v175_v7, 32 }
  0x2a   : > { %240 = vxpose.xlu1.b32.cont [5/16] (narrow) %v192_v8, 32 }
  0x2b   : > { %208 = vxpose.xlu0.b32.cont [5/16] (narrow) %v176_v9, 32 }
  0x2e   : > { %241 = vxpose.xlu1.b32.cont [6/16] (narrow) %v193_v10, 32 }
  0x2f   : > { %209 = vxpose.xlu0.b32.cont [6/16] (narrow) %v177_v11, 32 }
  0x32   : > { %242 = vxpose.xlu1.b32.cont [7/16] (narrow) %v194_v12, 32 }
  0x33   : > { %210 = vxpose.xlu0.b32.cont [7/16] (narrow) %v178_v13, 32 }
  0x36   : > { %243 = vxpose.xlu1.b32.cont [8/16] (narrow) %v195_v14, 32 }
  0x37   : > { %211 = vxpose.xlu0.b32.cont [8/16] (narrow) %v179_v15, 32 }
  0x3a   : > { %244 = vxpose.xlu1.b32.cont [9/16] (narrow) %v196_v16, 32 }
  0x3b   : > { %212 = vxpose.xlu0.b32.cont [9/16] (narrow) %v180_v17, 32 }
  0x3e   : > { %245 = vxpose.xlu1.b32.cont [10/16] (narrow) %v197_v18, 32 }
  0x3f   : > { %213 = vxpose.xlu0.b32.cont [10/16] (narrow) %v181_v19, 32 }
  0x42   : > { %246 = vxpose.xlu1.b32.cont [11/16] (narrow) %v198_v20, 32 }
  0x43   : > { %214 = vxpose.xlu0.b32.cont [11/16] (narrow) %v182_v21, 32 }
  0x46   : > { %247 = vxpose.xlu1.b32.cont [12/16] (narrow) %v199_v22, 32 }
  0x47   : > { %215 = vxpose.xlu0.b32.cont [12/16] (narrow) %v183_v23, 32 }
  0x4a   : > { %248 = vxpose.xlu1.b32.cont [13/16] (narrow) %v200_v24, 32 }
  0x4b   : > { %216 = vxpose.xlu0.b32.cont [13/16] (narrow) %v184_v25, 32 }
  0x4e   : > { %249 = vxpose.xlu1.b32.cont [14/16] (narrow) %v201_v26, 32 }
  0x4f   : > { %217 = vxpose.xlu0.b32.cont [14/16] (narrow) %v185_v27, 32 }
  0x52   : > { %250 = vxpose.xlu1.b32.cont [15/16] (narrow) %v202_v28, 32 }
  0x53   : > { %218 = vxpose.xlu0.b32.cont [15/16] (narrow) %v186_v29, 32 }
  0x56   : > { %251 = vxpose.xlu1.b32.end [16/16] (narrow) %v203_v30, 32 }
  0x57   : > { %219 = vxpose.xlu0.b32.end [16/16] (narrow) %v187_v31, 32 }
  0x9a   : > { %v252_v32 = vpop.trf.xlu1 }
  0x9b   : > { %v220_v33 = vpop.trf.xlu0  ;;  %272 = vst [vmem:[%s154_s27 + $0x20] sm:$0xff] %v252_v32 }
  0x9c   : > { %268 = vst [vmem:[%s154_s27] sm:$0xff] %v220_v33 }
  0x9e   : > { %v253_v34 = vpop.trf.xlu1 }
  0x9f   : > { %v221_v35 = vpop.trf.xlu0  ;;  %273 = vst [vmem:[%s154_s27 + $0x28] sm:$0xff] %v253_v34 }
  0xa0   : > { %269 = vst [vmem:[%s154_s27 + $0x8] sm:$0xff] %v221_v35 }
  0xa2   : > { %v254_v36 = vpop.trf.xlu1 }
  0xa3   : > { %v222_v37 = vpop.trf.xlu0  ;;  %274 = vst [vmem:[%s154_s27 + $0x30] sm:$0xff] %v254_v36 }
  0xa4   : > { %270 = vst [vmem:[%s154_s27 + $0x10] sm:$0xff] %v222_v37 }
  0xa6   : > { %v255_v38 = vpop.trf.xlu1 }
  0xa7   : > { %v223_v39 = vpop.trf.xlu0  ;;  %275 = vst [vmem:[%s154_s27 + $0x38] sm:$0xff] %v255_v38 }
  0xa8   : > { %271 = vst [vmem:[%s154_s27 + $0x18] sm:$0xff] %v223_v39 }
  0xa9   : > { %468 = shalt.err (!%p465_p5)
}
  0xaa   : > { %s469_s15 = scalar_lea.hbm %s648_s3, 1024  ;;  %s473_s21 = scalar_lea.hbm %s697_s1, 4096 }
  0xab   : > { %p470_p6 = scmp.ne.s32.totalorder %s648_s3, %s469_s15  ;;  %p474_p10 = scmp.lt.u32.totalorder %s648_s3, %s697_s1 }
  0xac   : > { %p475_p11 = scmp.lt.u32.totalorder %s473_s21, %s469_s15  ;;  %p477_p13 = scmp.lt.u32.totalorder %s469_s15, %s648_s3 }
  0xad   : > { %p471_p7 = pnand %p470_p6, %p588_p4 }
  0xae   : > { %p476_p12 = por %p475_p11, %p474_p10 }
  0xaf   : > { %p472_p9 = pneg %p471_p7 }
  0xb0   : > { %p478_p0 = por %p477_p13, %p476_p12 }
  0xb2   : > { %p479_p1 = pnand %p478_p0, %p472_p9 }
  0xb4   : > { %482 = shalt.err (!%p479_p1)
}
  0xb5   : > { %s536_s24 = smov 128   ;;  %s537_s25 = smov 8  }
  0xb6   : > { %398 = dma.vmem_to_hbm [thread:$0]  (%p588_p4), %s643_s28, 1024, %s648_s3, %s650_s4, %s536_s24, %s536_s24, %s537_s25  }
  0xb7 PF: > { %p404_p2 = scmp.ge.s32.totalorder %s533_s11, 2  ;;  %s309_s26 = sand.u32 1, %s513_s6  }
  0xb8   : > { %s310_s27 = scalar_lea.sflag [#allocation3], %s309_s26 }
  0xb9   : > { %p401_p3 = pnand %p404_p2, %p595_p8 }
  0xbb   : > { %508 = dma.done.wait (!%p401_p3), %s310_s27, 1024  }
  0xbc   : > { %510 = vsyncadd (!%p401_p3), %s310_s27, 4294966272  ;;  %s14_s11 = sadd.s32 1, %s533_s11   ;;  %s700_s6 = smov %s517_s7 }
  0xbd   : > { %p11_p5 = scmp.ge.s32.totalorder %s14_s11, 6   ;;  %s701_s7 = smov %s521_s8 }
  0xbe   : > { %s702_s8 = smov %s601_s19  ;;  %s703_s9 = smov %s529_s10 }
  0xbf   : > { %s704_s10 = smov %s706_s14  ;;  %13 = sbr.rel (!%p11_p5) target bundleno = 4 (0x4), region = 59 }
  0xc6   :  { %315 = vsyncpa [#allocation3], 1 }
  0xc7   :  { %317 = vsyncpa [#allocation3 + $0x1], 1 }

</bundles_post_ra>
